<compile_context>
chip_gen: v5e
topology: v5e:2x2
jax: 0.10.0
libtpu: 0.0.40
codegen_flags: <defaults>
</compile_context>

<pallas_src>
import functools

import jax
import jax.numpy as jnp
from jax.experimental import pallas as pl
from jax.experimental.pallas import tpu as pltpu

NUM_CLASSES = 5
_LANE = 128


def _round_up(n, m):
    return ((n + m - 1) // m) * m


def _vmem_budget_bytes():
    """Generation-aware scoped-VMEM budget (~75% of physical per-core VMEM)."""
    cap = 64 * 1024 * 1024  # conservative fallback: v7x per-TensorCore VMEM
    try:
        cap = int(pltpu.get_tpu_info().vmem_capacity_bytes)
    except Exception:
        pass
    return int(cap * 3 // 4)


def _pick_tm(batch, d, out_cols, vmem_budget):
    """Rows per batch tile.

    Bytes-based: target ~8 MiB x tile, bounded by the VMEM budget accounting for
    double-buffered x / output (both lane-padded to 128 in VMEM) and a single-buffered
    W block. 256-aligned when possible (MXU-friendly); multiple of 8 always; capped
    near ceil(B/2) for big batches so v7x's two TensorCores both get grid steps.
    """
    row_in_vmem = _round_up(d, _LANE) * 4            # x row in VMEM (f32, lane-padded)
    row_out_vmem = _round_up(out_cols, _LANE) * 4    # output row in VMEM (lane-padded)
    w_vmem = _round_up(d, 8) * _round_up(out_cols, _LANE) * 4  # single-buffered W
    per_row = 2 * row_in_vmem + 2 * row_out_vmem     # double-buffered x and output
    avail = vmem_budget - w_vmem - (256 << 10)       # headroom (bias, semaphores, misc)
    tm_vmem = max(8, avail // per_row)
    tm_target = max(8, (8 << 20) // row_in_vmem)     # ~8 MiB x tile target
    tm = min(tm_vmem, tm_target)

    # Keep >= 2 grid steps for large batches (v7x megacore sharding of the parallel axis).
    half_b = _round_up(pl.cdiv(batch, 2), 8)
    if half_b >= 256:
        tm = min(tm, half_b)

    if tm >= 256:
        tm = (tm // 256) * 256
    else:
        tm = (tm // 8) * 8
    tm = min(tm, _round_up(batch, 8))
    return max(8, tm)


def _logits_kernel(x_ref, w_ref, b_ref, out_ref):
    # logits tile = x_tile @ W + b   (MXU matmul, f32 accumulate)
    out_ref[...] = (
        jnp.dot(x_ref[...], w_ref[...], preferred_element_type=jnp.float32)
        + b_ref[...]
    ).astype(out_ref.dtype)


def _ce_loss_kernel(x_ref, w_ref, b_ref, y_ref, loss_ref, *, tm, batch):
    # Fused: logits -> numerically-stable log-softmax -> label logit -> per-row loss.
    logits = (
        jnp.dot(x_ref[...], w_ref[...], preferred_element_type=jnp.float32)
        + b_ref[...]
    )
    m = jnp.max(logits, axis=-1, keepdims=True)
    lse = jnp.log(jnp.sum(jnp.exp(logits - m), axis=-1, keepdims=True)) + m
    cls = jax.lax.broadcasted_iota(jnp.int32, logits.shape, 1)
    picked = jnp.sum(
        jnp.where(cls == y_ref[...], logits, 0.0), axis=-1, keepdims=True
    )
    # Rows past the real batch (last partial tile) hold garbage; select 0 for them.
    # Keep this a jnp.where select (NOT a multiply): garbage rows may contain Inf/NaN.
    row = pl.program_id(0) * tm + jax.lax.broadcasted_iota(jnp.int32, (tm, 1), 0)
    loss_ref[...] = jnp.where(row < batch, lse - picked, 0.0)


def torch_model_forward(x, w, b, y_label=None):
    """Equivalent of TorchModel.forward.

    x: (B, D) f32/bf16; w: (D, 5) f32; b: (5,) f32; y_label: optional (B,) int labels.
    Returns logits (B, 5) if y_label is None, else scalar mean cross-entropy loss.
    """
    B, D = x.shape
    C = w.shape[1]

    # Keep caller-provided bf16 activations (halves the dominant HBM read); cast inside
    # the kernel is handled by the MXU with f32 accumulation. Non-float inputs -> f32.
    if x.dtype not in (jnp.dtype(jnp.float32), jnp.dtype(jnp.bfloat16)):
        x = x.astype(jnp.float32)

    budget = _vmem_budget_bytes()
    # Lane-dense (128-wide) output only when D is large enough that output bytes are
    # negligible next to the x read; for small D write the (tm, 5) full-dim block.
    out_cols = _LANE if (y_label is None and D * 4 >= 2048) else C
    tm = _pick_tm(B, D, out_cols, budget)
    grid = (pl.cdiv(B, tm),)

    compiler_params = pltpu.CompilerParams(
        dimension_semantics=("parallel",),
        vmem_limit_bytes=budget,
    )

    # W / bias blocks never change across the grid -> single VMEM buffer is enough.
    w_spec = pl.BlockSpec((D, out_cols), lambda i: (0, 0),
                          pipeline_mode=pl.Buffered(1))
    b_spec = pl.BlockSpec((1, out_cols), lambda i: (0, 0),
                          pipeline_mode=pl.Buffered(1))

    # TODO(synk): for very large input_size (D >= ~32K the W block alone nears the v7x
    # VMEM budget) add a K grid axis with an f32 VMEM accumulator (pl.when init/finalize,
    # dimension_semantics ("parallel", "arbitrary")).

    if y_label is None:
        w_p = w.astype(jnp.float32)
        b_p = b.astype(jnp.float32).reshape(1, C)
        if out_cols != C:
            w_p = jnp.pad(w_p, ((0, 0), (0, out_cols - C)))
            b_p = jnp.pad(b_p, ((0, 0), (0, out_cols - C)))
        out = pl.pallas_call(
            _logits_kernel,
            out_shape=jax.ShapeDtypeStruct((B, out_cols), jnp.float32),
            grid=grid,
            in_specs=[
                pl.BlockSpec((tm, D), lambda i: (i, 0)),
                w_spec,
                b_spec,
            ],
            out_specs=pl.BlockSpec((tm, out_cols), lambda i: (i, 0)),
            compiler_params=compiler_params,
        )(x, w_p, b_p)
        return out if out_cols == C else out[:, :C]

    # Loss path: keep C=5 inside the kernel (no padded class columns to poison the
    # log-sum-exp); per-row losses written per tile, reduced to the mean in the wrapper
    # (safe under parallel grid semantics).
    y_p = y_label.reshape(B, 1).astype(jnp.int32)
    w2 = w.astype(jnp.float32)
    b2 = b.astype(jnp.float32).reshape(1, C)

    per_row = pl.pallas_call(
        functools.partial(_ce_loss_kernel, tm=tm, batch=B),
        out_shape=jax.ShapeDtypeStruct((B, 1), jnp.float32),
        grid=grid,
        in_specs=[
            pl.BlockSpec((tm, D), lambda i: (i, 0)),
            w_spec,
            b_spec,
            pl.BlockSpec((tm, 1), lambda i: (i, 0)),
        ],
        out_specs=pl.BlockSpec((tm, 1), lambda i: (i, 0)),
        compiler_params=compiler_params,
    )(x, w2, b2, y_p)
    # TODO(synk): a per-tile (1,1) partial-sum output would shrink this write to
    # grid-length, but the (tm,1) per-row block keeps the last-two-dim tiling rules
    # trivially satisfied and the write is already minor (~few %).
    return jnp.sum(per_row) / B


def _reference(x, w, b, y_label=None):
    logits = x @ w + b
    if y_label is None:
        return logits
    lse = jax.scipy.special.logsumexp(logits, axis=-1)
    picked = jnp.take_along_axis(logits, y_label[:, None], axis=-1)[:, 0]
    return jnp.mean(lse - picked)


def _make_inputs(key, batch, d):
    kx, kw, kb, ky = jax.random.split(key, 4)
    x = jax.random.normal(kx, (batch, d), dtype=jnp.float32)
    bound = 1.0 / (d ** 0.5)  # mimic PyTorch Linear uniform init
    w = jax.random.uniform(kw, (d, NUM_CLASSES), minval=-bound, maxval=bound,
                           dtype=jnp.float32)
    b = jax.random.uniform(kb, (NUM_CLASSES,), minval=-bound, maxval=bound,
                           dtype=jnp.float32)
    y = jax.random.randint(ky, (batch,), 0, NUM_CLASSES, dtype=jnp.int32)
    return x, w, b, y


if __name__ == "__main__":
    key = jax.random.PRNGKey(0)

    # Small canonical shapes consistent with nn.Linear(input_size, 5).
    B, D = 8, 32
    x, w, b, y_label = _make_inputs(key, B, D)

    logits = torch_model_forward(x, w, b)              # inference path
    loss = torch_model_forward(x, w, b, y_label)       # training path (mean CE)
    jax.block_until_ready(logits)
    jax.block_until_ready(loss)
    assert jnp.allclose(logits, _reference(x, w, b), atol=1e-4, rtol=1e-4)
    assert jnp.allclose(loss, _reference(x, w, b, y_label), atol=1e-4, rtol=1e-4)

    # Larger ragged batch: exercises cdiv grid, multi-tile pipeline, partial-block mask.
    B2, D2 = 1037, 64
    x2, w2, b2, y2 = _make_inputs(jax.random.PRNGKey(1), B2, D2)
    logits2 = torch_model_forward(x2, w2, b2)
    loss2 = torch_model_forward(x2, w2, b2, y2)
    jax.block_until_ready(logits2)
    jax.block_until_ready(loss2)
    assert jnp.allclose(logits2, _reference(x2, w2, b2), atol=1e-4, rtol=1e-4)
    assert jnp.allclose(loss2, _reference(x2, w2, b2, y2), atol=1e-4, rtol=1e-4)

    # Wide-feature case: exercises the lane-dense (128-wide) logits branch + slice.
    B3, D3 = 300, 512
    x3, w3, b3, y3 = _make_inputs(jax.random.PRNGKey(2), B3, D3)
    logits3 = torch_model_forward(x3, w3, b3)
    loss3 = torch_model_forward(x3, w3, b3, y3)
    jax.block_until_ready(logits3)
    jax.block_until_ready(loss3)
    assert jnp.allclose(logits3, _reference(x3, w3, b3), atol=2e-3, rtol=2e-3)
    assert jnp.allclose(loss3, _reference(x3, w3, b3, y3), atol=2e-3, rtol=2e-3)

    print("KERNEL_OK")
</pallas_src>

<mosaic_0001>
module attributes {stable_mosaic.version = 11 : i64} {
  func.func @_logits_kernel(%arg0: i32, %arg1: memref<8x32xf32, #tpu.memory_space<vmem>>, %arg2: memref<32x5xf32, #tpu.memory_space<vmem>>, %arg3: memref<1x5xf32, #tpu.memory_space<vmem>>, %arg4: memref<8x5xf32, #tpu.memory_space<vmem>>) attributes {dimension_semantics = [#tpu.dimension_semantics<parallel>], iteration_bounds = array<i64: 1>, scalar_prefetch = 0 : i64, scratch_operands = 0 : i64, tpu.core_type = #tpu.core_type<tc>, window_params = [{transform_indices = @transform_0, window_bounds = array<i64: 8, 32>}, {pipeline_mode = #tpu.pipeline_mode<synchronous>, transform_indices = @transform_1, window_bounds = array<i64: 32, 5>}, {pipeline_mode = #tpu.pipeline_mode<synchronous>, transform_indices = @transform_2, window_bounds = array<i64: 1, 5>}, {transform_indices = @transform_3, window_bounds = array<i64: 8, 5>}]} {
    %c0 = arith.constant 0 : index
    %c0_0 = arith.constant 0 : index
    %0 = vector.load %arg1[%c0, %c0_0] : memref<8x32xf32, #tpu.memory_space<vmem>>, vector<8x32xf32>
    %c0_1 = arith.constant 0 : index
    %c0_2 = arith.constant 0 : index
    %1 = vector.load %arg2[%c0_1, %c0_2] : memref<32x5xf32, #tpu.memory_space<vmem>>, vector<32x5xf32>
    %cst = arith.constant dense<0.000000e+00> : vector<8x5xf32>
    %2 = tpu.matmul %0, %1, %cst {dimension_numbers = #tpu.dot_dimension_numbers<[1], [0], [0], [1], [0, 0, 1, 1], [], []>} : vector<8x32xf32>, vector<32x5xf32>, vector<8x5xf32> -> vector<8x5xf32>
    %c0_3 = arith.constant 0 : index
    %c0_4 = arith.constant 0 : index
    %3 = vector.load %arg3[%c0_3, %c0_4] : memref<1x5xf32, #tpu.memory_space<vmem>>, vector<1x5xf32>
    %4 = vector.broadcast %3 : vector<1x5xf32> to vector<8x5xf32>
    %5 = arith.addf %2, %4 : vector<8x5xf32>
    %c0_5 = arith.constant 0 : index
    %c0_6 = arith.constant 0 : index
    %6 = vector.load %arg4[%c0_5, %c0_6] : memref<8x5xf32, #tpu.memory_space<vmem>>, vector<8x5xf32>
    tpu.vector_store %arg4[%c0_5, %c0_6], %5 {strides = array<i32>} : memref<8x5xf32, #tpu.memory_space<vmem>>, vector<8x5xf32>,
    return
  }
  func.func @transform_0(%arg0: i32) -> (i32, i32) {
    %c0_i32 = arith.constant 0 : i32
    %c0_i32_0 = arith.constant 0 : i32
    return %arg0, %c0_i32 : i32, i32
  }
  func.func @transform_1(%arg0: i32) -> (i32, i32) {
    %c0_i32 = arith.constant 0 : i32
    %c0_i32_0 = arith.constant 0 : i32
    %c0_i32_1 = arith.constant 0 : i32
    return %c0_i32, %c0_i32_0 : i32, i32
  }
  func.func @transform_2(%arg0: i32) -> (i32, i32) {
    %c0_i32 = arith.constant 0 : i32
    %c0_i32_0 = arith.constant 0 : i32
    %c0_i32_1 = arith.constant 0 : i32
    return %c0_i32, %c0_i32_0 : i32, i32
  }
  func.func @transform_3(%arg0: i32) -> (i32, i32) {
    %c0_i32 = arith.constant 0 : i32
    %c0_i32_0 = arith.constant 0 : i32
    return %arg0, %c0_i32 : i32, i32
  }
}

</mosaic_0001>

<bundles_post_ra>
// kernel: tpu_custom_call.1
= control target key start
LH: loop header
LB: loop body
LE: loop exit
PB: predicated region body
PF: predicated region fallthrough
CT: control target
= control target key end

     0   :  { %s137_s0 = inlined_call_operand.vmem [shape: f32[8,32], index: 0, kind: input, shape index: {}]   ;;  %s138_s1 = inlined_call_operand.vmem [shape: f32[32,5], index: 1, kind: input, shape index: {}]   ;;  %s139_s2 = inlined_call_operand.vmem [shape: f32[1,5], index: 2, kind: input, shape index: {}]   ;;  %s140_s3 = inlined_call_operand.hbm [shape: f32[8,5], index: 3, kind: output, shape index: {}]  }
   0x1   :  { %v19_v0 = vld [vmem:[%s138_s1 + $0x18] sm:$0xff]  ;;  %v18_v1 = vld [vmem:[%s138_s1 + $0x10] sm:$0xff]  ;;  %v17_v2 = vld [vmem:[%s138_s1 + $0x8] sm:$0xff] }
   0x2   :  { %40 = vmatpush.msra.mxu0 %v19_v0 }
   0x3   :  { %8 = vsyncpa [#allocation3], 0  ;;  %v16_v3 = vld [vmem:[%s138_s1] sm:$0xff]  ;;  %vm24_vm0 = vcmask 261120   ;;  %s95_s24 = smov [#allocation2]   ;;  %s57_s28 = sshll.u32 %s140_s3, 4  ;;  %s58_s28 = int_to_ptr.hbm [resolvable:$true] %s57_s28 }
   0x4   :  { %41 = vmatpush.msra.mxu0 %v18_v1  ;;  %v15_v4 = vld [vmem:[%s137_s0] sm:$0xff]  ;;  %s55_s25 = sshll.u32 %s95_s24, 4  ;;  %vm48_vm1 = vcmask 39936   ;;  %s56_s25 = int_to_ptr.vmem [resolvable:$true] %s55_s25 }
   0x5   :  { %v68_v5 = vld [vmem:[%s139_s2] ss:$0 sm:$0xff] }
   0x6   :  { %42 = vmatpush.msra.mxu0 %v17_v2 }
   0x8   :  { %43 = vmatpush.msra.mxu0 %v16_v3 }
   0x9   :  { %66 = vmatmul.msk.f32.vlgmr.msra.gmra.mxu0 %vm24_vm0, %v15_v4 }
  0x86   :  { %v45_v6 = vpop.f32.mrf.mxu0 }
  0x87   :  { %v46_v7 = vadd.f32 %v68_v5, %v45_v6 }
  0x89   :  { %49 = vst.msk [vmem:[#allocation2] sm:$0xff] %vm48_vm1, %v46_v7 }
  0x8a   :  { %60 = dma.vmem_to_hbm [thread:$0]  %s56_s25, 128, %s58_s28, [#allocation3]  }
  0x8b   :  { %93 = dma.done.wait [#allocation3], 128  }
  0x8c   :  { %94 = vsyncadd [#allocation3], 4294967168 }
  0x8d   :  { %65 = vsyncpa [#allocation3], 1 }

</bundles_post_ra>
